<compile_context>
chip_gen: v7x
topology: tpu7x:2x2x1
jax: 0.10.0
libtpu: 0.0.40
codegen_flags: <defaults>
</compile_context>

<pallas_src>
import math

import jax
import jax.numpy as jnp
from jax.experimental import pallas as pl
from jax.experimental.pallas import tpu as pltpu

LANE = 128


def _round_up(x, m):
    return (x + m - 1) // m * m


def _timestep_embedder_kernel(ts_ref, t1_ref, w2_ref, b2_ref, o_ref):
    # ts_ref : (B, 1)    int32     -- timestep indices
    # t1_ref : (L, Dp)   bfloat16  -- precomputed pe @ W1 + b1, feature dim zero-padded to Dp
    # w2_ref : (Dp, Dp)  bfloat16  -- second Linear weight, stored (in, out)
    # b2_ref : (1, Dp)   float32   -- second Linear bias
    # o_ref  : (1, B, Dp) float32  -- already in the final permuted layout
    B = ts_ref.shape[0]
    L = t1_ref.shape[0]

    # Clamp indices like an XLA gather would (PyTorch would raise; silent zero-row is worse).
    ts = jnp.clip(ts_ref[...], 0, L - 1)                            # (B, 1) int32

    # Fused gather T1[timesteps]: exact one-hot row selection on the MXU, all-bf16 operands
    # (0/1 one-hot and the bf16 table rows are selected exactly; accumulation is f32).
    iota = jax.lax.broadcasted_iota(jnp.int32, (B, L), 1)           # (B, L)
    one_hot = (iota == ts).astype(jnp.bfloat16)                     # (B, L)
    h = jnp.dot(one_hot, t1_ref[...],
                preferred_element_type=jnp.float32)                 # (B, Dp) f32 == (pe[ts]@W1+b1)

    # SiLU in f32 (EUP sigmoid; keep f32 activation math - v5e has no bf16 VPU/EUP path).
    h = h * jax.nn.sigmoid(h)                                       # (B, Dp) f32

    # Second Linear: bf16 MXU operands, f32 accumulate, f32 bias add.
    y = jnp.dot(h.astype(jnp.bfloat16), w2_ref[...],
                preferred_element_type=jnp.float32) + b2_ref[...]   # (B, Dp) f32

    o_ref[0] = y                                                    # final (1, B, Dp) layout


def timestep_embedder_forward(timesteps, params):
    """Mirror of TimestepEmbedder.forward: timesteps () or (B,) int -> (1, B, D) float32.

    TODO(synk): the real-world win at B~8 is amortizing the pallas_call launch: embed the whole
    sampling schedule (all diffusion steps) in one call, or fuse this into the surrounding DiT
    block's kernel.
    """
    if timesteps.ndim == 0:
        timesteps = timesteps[None]
    B = timesteps.shape[0]
    t1, w2, b2, D = params["t1"], params["w2"], params["b2"], params["D"]
    L, Dp = t1.shape
    ts2d = timesteps.astype(jnp.int32).reshape(B, 1)

    vmem = pl.BlockSpec(memory_space=pltpu.MemorySpace.VMEM)
    out = pl.pallas_call(
        _timestep_embedder_kernel,
        out_shape=jax.ShapeDtypeStruct((1, B, Dp), jnp.float32),
        in_specs=[vmem, vmem, vmem, vmem],
        out_specs=vmem,
        # TODO(synk): for production latent_dim, budget VMEM explicitly (~2*Dp^2 bf16 bytes for W2
        # + L*Dp*2 for T1): first raise vmem_limit_bytes via pltpu.CompilerParams (32 MiB scoped
        # default; stay under ~48-56 MiB of v7x's 64 MiB physical VMEM), and only then tile the
        # weight output (N) dim in 256-aligned tiles marked "parallel" (megacore on v7x), keeping
        # B untiled and h resident in VMEM scratch, with the weight stream double-buffered.
    )(ts2d, t1, w2, b2)
    if Dp != D:
        out = out[:, :, :D]  # drop lane padding; output is already the permuted (1, B, D) result
    return out


def make_sinusoidal_pe(max_len, d_model):
    """Standard PyTorch-style PositionalEncoding buffer, shape (max_len, 1, d_model)."""
    position = jnp.arange(max_len, dtype=jnp.float32)[:, None]                # (L, 1)
    div_term = jnp.exp(
        jnp.arange(0, d_model, 2, dtype=jnp.float32) * (-math.log(10000.0) / d_model)
    )                                                                          # (D/2,)
    angles = position * div_term                                               # (L, D/2)
    pe = jnp.zeros((max_len, d_model), dtype=jnp.float32)
    pe = pe.at[:, 0::2].set(jnp.sin(angles))
    pe = pe.at[:, 1::2].set(jnp.cos(angles))
    return pe[:, None, :]                                                      # (L, 1, D)


def init_params(key, latent_dim):
    """Synthetic weights for time_embed = Linear(D,D) -> SiLU -> Linear(D,D), stored (in, out)."""
    k1, k2, k3, k4 = jax.random.split(key, 4)
    bound = 1.0 / math.sqrt(latent_dim)
    w1 = jax.random.uniform(k1, (latent_dim, latent_dim), jnp.float32, -bound, bound)
    b1 = jax.random.uniform(k2, (1, latent_dim), jnp.float32, -bound, bound)
    w2 = jax.random.uniform(k3, (latent_dim, latent_dim), jnp.float32, -bound, bound)
    b2 = jax.random.uniform(k4, (1, latent_dim), jnp.float32, -bound, bound)
    return w1, b1, w2, b2


def prepare_params(pe, w1, b1, w2, b2):
    """One-time packing for the kernel (frozen PE table + frozen inference weights):
      * fold the first Linear into the table: T1 = pe @ W1 + b1, computed in full f32;
      * zero-pad the feature dim to a 128-lane multiple (padded lanes stay exactly zero end-to-end);
      * store T1 / W2 as bf16 (MXU-native, halves DMA+VMEM bytes), bias stays f32.
    TODO(synk): for very large max_len, switch the in-kernel one-hot gather to a scalar-prefetch
    row gather (PrefetchScalarGridSpec + pl.Element index_map) so only B rows of T1 are DMA'd.
    """
    L, _, D = pe.shape
    Dp = _round_up(D, LANE)
    pad = Dp - D
    t1 = pe[:, 0, :] @ w1 + b1                                                 # (L, D) f32
    t1p = jnp.pad(t1, ((0, 0), (0, pad))).astype(jnp.bfloat16)                 # (L, Dp) bf16
    w2p = jnp.pad(w2, ((0, pad), (0, pad))).astype(jnp.bfloat16)               # (Dp, Dp) bf16
    b2p = jnp.pad(b2, ((0, 0), (0, pad)))                                      # (1, Dp) f32
    return {"t1": t1p, "w2": w2p, "b2": b2p, "D": D}


if __name__ == "__main__":
    latent_dim = 32
    max_len = 64
    batch = 8

    key = jax.random.PRNGKey(0)
    k_params, k_ts = jax.random.split(key)

    pe = make_sinusoidal_pe(max_len, latent_dim)                  # (L, 1, D), like the PyTorch buffer
    w1, b1, w2, b2 = init_params(k_params, latent_dim)
    params = prepare_params(pe, w1, b1, w2, b2)
    timesteps = jax.random.randint(k_ts, (batch,), 0, max_len, dtype=jnp.int32)

    out = timestep_embedder_forward(timesteps, params)
    out = jax.block_until_ready(out)

    assert out.shape == (1, batch, latent_dim), out.shape
    assert out.dtype == jnp.float32

    # Reference 1: same math as the kernel (bf16 T1 gather, bf16 W2 matmul, f32 accumulate) in JAX.
    h_ref = params["t1"][timesteps].astype(jnp.float32)[:, :]                  # (B, Dp)
    h_ref = h_ref * jax.nn.sigmoid(h_ref)
    y_ref = jnp.dot(h_ref.astype(jnp.bfloat16), params["w2"],
                    preferred_element_type=jnp.float32) + params["b2"]
    ref_bf16 = y_ref[:, :latent_dim].reshape(batch, 1, latent_dim).transpose(1, 0, 2)
    assert jnp.allclose(out, ref_bf16, atol=5e-3, rtol=5e-3)

    # Reference 2: original full-f32 module semantics (bf16 weight approximation sanity check).
    x32 = pe[timesteps].reshape(batch, latent_dim)
    h32 = x32 @ w1 + b1
    h32 = h32 * jax.nn.sigmoid(h32)
    ref_f32 = (h32 @ w2 + b2).reshape(batch, 1, latent_dim).transpose(1, 0, 2)
    assert jnp.allclose(out, ref_f32, atol=3e-2, rtol=3e-2)

    print("KERNEL_OK")
</pallas_src>

<mosaic_0001>
module attributes {stable_mosaic.version = 11 : i64} {
  func.func @_timestep_embedder_kernel(%arg0: memref<8x1xi32, #tpu.memory_space<vmem>>, %arg1: memref<64x128xbf16, #tpu.memory_space<vmem>>, %arg2: memref<128x128xbf16, #tpu.memory_space<vmem>>, %arg3: memref<1x128xf32, #tpu.memory_space<vmem>>, %arg4: memref<1x8x128xf32, #tpu.memory_space<vmem>>) attributes {dimension_semantics = [], scalar_prefetch = 0 : i64, scratch_operands = 0 : i64, tpu.core_type = #tpu.core_type<tc>} {
    %c0 = arith.constant 0 : index
    %c0_0 = arith.constant 0 : index
    %0 = vector.load %arg0[%c0, %c0_0] : memref<8x1xi32, #tpu.memory_space<vmem>>, vector<8x1xi32>
    %c0_i32 = arith.constant 0 : i32
    %c63_i32 = arith.constant 63 : i32
    %1 = vector.broadcast %c0_i32 : i32 to vector<8x1xi32>
    %2 = arith.maxsi %1, %0 : vector<8x1xi32>
    %3 = vector.broadcast %c63_i32 : i32 to vector<8x1xi32>
    %4 = arith.minsi %3, %2 : vector<8x1xi32>
    %5 = tpu.iota {dimensions = array<i32: 1>} : vector<8x64xi32>
    %6 = vector.broadcast %4 : vector<8x1xi32> to vector<8x64xi32>
    %7 = arith.cmpi eq, %5, %6 : vector<8x64xi32>
    %8 = arith.extui %7 : vector<8x64xi1> to vector<8x64xi32>
    %9 = arith.sitofp %8 : vector<8x64xi32> to vector<8x64xf32>
    %10 = arith.truncf %9 : vector<8x64xf32> to vector<8x64xbf16>
    %c0_1 = arith.constant 0 : index
    %c0_2 = arith.constant 0 : index
    %11 = vector.load %arg1[%c0_1, %c0_2] : memref<64x128xbf16, #tpu.memory_space<vmem>>, vector<64x128xbf16>
    %cst = arith.constant dense<0.000000e+00> : vector<8x128xf32>
    %12 = tpu.matmul %10, %11, %cst {dimension_numbers = #tpu.dot_dimension_numbers<[1], [0], [0], [1], [0, 0, 1, 1], [], []>} : vector<8x64xbf16>, vector<64x128xbf16>, vector<8x128xf32> -> vector<8x128xf32>
    %13 = arith.negf %12 : vector<8x128xf32>
    %14 = math.exp %13 : vector<8x128xf32>
    %cst_3 = arith.constant 1.000000e+00 : f32
    %15 = vector.broadcast %cst_3 : f32 to vector<8x128xf32>
    %16 = arith.addf %15, %14 : vector<8x128xf32>
    %17 = arith.divf %15, %16 : vector<8x128xf32>
    %18 = arith.mulf %12, %17 : vector<8x128xf32>
    %19 = arith.truncf %18 : vector<8x128xf32> to vector<8x128xbf16>
    %c0_4 = arith.constant 0 : index
    %c0_5 = arith.constant 0 : index
    %20 = vector.load %arg2[%c0_4, %c0_5] : memref<128x128xbf16, #tpu.memory_space<vmem>>, vector<128x128xbf16>
    %cst_6 = arith.constant dense<0.000000e+00> : vector<8x128xf32>
    %21 = tpu.matmul %19, %20, %cst_6 {dimension_numbers = #tpu.dot_dimension_numbers<[1], [0], [0], [1], [0, 0, 1, 1], [], []>} : vector<8x128xbf16>, vector<128x128xbf16>, vector<8x128xf32> -> vector<8x128xf32>
    %c0_7 = arith.constant 0 : index
    %c0_8 = arith.constant 0 : index
    %22 = vector.load %arg3[%c0_7, %c0_8] : memref<1x128xf32, #tpu.memory_space<vmem>>, vector<1x128xf32>
    %23 = vector.broadcast %22 : vector<1x128xf32> to vector<8x128xf32>
    %24 = arith.addf %21, %23 : vector<8x128xf32>
    %c0_9 = arith.constant 0 : index
    %c0_10 = arith.constant 0 : index
    %c0_11 = arith.constant 0 : index
    %25 = vector.load %arg4[%c0_9, %c0_10, %c0_11] : memref<1x8x128xf32, #tpu.memory_space<vmem>>, vector<1x8x128xf32>
    %26 = vector.shape_cast %25 : vector<1x8x128xf32> to vector<8x128xf32>
    %27 = vector.shape_cast %24 : vector<8x128xf32> to vector<1x8x128xf32>
    tpu.vector_store %arg4[%c0_9, %c0_10, %c0_11], %27 {strides = array<i32>} : memref<1x8x128xf32, #tpu.memory_space<vmem>>, vector<1x8x128xf32>,
    return
  }
}

</mosaic_0001>

<bundles_post_ra>
// kernel: tpu_custom_call.1
= control target key start
LH: loop header
LB: loop body
LE: loop exit
PB: predicated region body
PF: predicated region fallthrough
CT: control target
= control target key end

     0   :  { %9 = vsyncpa [#allocation3], 0  ;;  %s507_s0 = inlined_call_operand.vmem [shape: s32[8,1], index: 0, kind: input, shape index: {}]   ;;  %s508_s1 = inlined_call_operand.hbm [shape: bf16[64,128], index: 1, kind: input, shape index: {}]   ;;  %s509_s2 = inlined_call_operand.hbm [shape: bf16[128,128], index: 2, kind: input, shape index: {}]   ;;  %s510_s3 = inlined_call_operand.vmem [shape: f32[1,128], index: 3, kind: input, shape index: {}]   ;;  %s511_s4 = inlined_call_operand.hbm [shape: f32[1,8,128], index: 4, kind: output, shape index: {}]  }
   0x1   :  { %10 = vsyncpa [#allocation6], 0 }
   0x2   :  { %11 = vsyncpa [#allocation4], 0  ;;  %s432_s15 = smov [#allocation2]   ;;  %s360_s19 = scalar_lea.hbm %s508_s1, 512 }
   0x3   :  { %s19_s16 = sshll.u32 %s432_s15, 4  ;;  %p361_p0 = scmp.ne.s32.totalorder %s508_s1, %s360_s19  ;;  %s20_s16 = int_to_ptr.vmem [resolvable:$true] %s19_s16 }
   0x4   :  { %p364_p1 = scmp.lt.u32.totalorder %s360_s19, %s508_s1 }
   0x6   :  { %p366_p2 = pnand %p364_p1, %p361_p0 }
   0x8   :  { %369 = shalt.err (!%p366_p2)
}
   0x9   :  { %s370_s24 = scalar_lea.vmem %s20_s16, 512  ;;  %p375_p4 = scmp.lt.s32.totalorder %s20_s16, %s20_s16 }
   0xa   :  { %p371_p3 = scmp.ne.s32.totalorder %s20_s16, %s370_s24  ;;  %p376_p5 = scmp.lt.s32.totalorder %s370_s24, %s370_s24 }
   0xc   :  { %p377_p6 = por %p376_p5, %p375_p4 }
   0xe   :  { %p378_p7 = pnand %p377_p6, %p371_p3 }
  0x10   :  { %381 = shalt.err (!%p378_p7)
}
  0x11   :  { %s433_s25 = smov 64   ;;  %s434_s26 = smov 4  }
  0x12   :  { %25 = dma.hbm_to_vmem [thread:$0]  %s508_s1, 512, %s20_s16, [#allocation3], %s433_s25, %s433_s25, %s434_s26  }
  0x13   :  { %s435_s29 = smov [#allocation5]   ;;  %s382_s7 = scalar_lea.hbm %s509_s2, 1024 }
  0x14   :  { %s31_s30 = sshll.u32 %s435_s29, 4  ;;  %p383_p8 = scmp.ne.s32.totalorder %s509_s2, %s382_s7  ;;  %s32_s30 = int_to_ptr.vmem [resolvable:$true] %s31_s30 }
  0x15   :  { %p386_p9 = scmp.lt.u32.totalorder %s382_s7, %s509_s2 }
  0x17   :  { %p388_p10 = pnand %p386_p9, %p383_p8 }
  0x19   :  { %391 = shalt.err (!%p388_p10)
}
  0x1a   :  { %s392_s12 = scalar_lea.vmem %s32_s30, 1024  ;;  %p397_p12 = scmp.lt.s32.totalorder %s32_s30, %s32_s30 }
  0x1b   :  { %p393_p11 = scmp.ne.s32.totalorder %s32_s30, %s392_s12  ;;  %p398_p13 = scmp.lt.s32.totalorder %s392_s12, %s392_s12 }
  0x1d   :  { %p399_p0 = por %p398_p13, %p397_p12 }
  0x1f   :  { %p400_p1 = pnand %p399_p0, %p393_p11 }
  0x21   :  { %403 = shalt.err (!%p400_p1)
}
  0x22   :  { %37 = dma.hbm_to_vmem [thread:$0]  %s509_s2, 1024, %s32_s30, [#allocation6], %s433_s25, %s433_s25, %s434_s26  }
  0x23   :  { %426 = dma.done.wait [#allocation3], 512  }
  0x24   :  { %427 = vsyncadd [#allocation3], 4294966784 }
  0x25   :  { %428 = dma.done.wait [#allocation6], 1024  }
  0x26   :  { %429 = vsyncadd [#allocation6], 4294966272  ;;  %v436_v0 = vmov 0   ;;  %v437_v1 = vmov 0.0   ;;  %v47_v2 = vld [vmem:[%s507_s0] sm:$0xff]  ;;  %v344_v3 = vld [vmem:[#allocation2] sm:$0xff]   ;;  %v52_v9 = vlaneseq }
  0x27   :  { %343 = vset.pattern.permute.xlu0 %v436_v0  ;;  %303 = vmatprep.subr.bf16.mxu0 %v437_v1  ;;  %vm48_vm0 = vcmp.gt.s32.totalorder %v47_v2, 0  ;;  %v345_v5 = vld [vmem:[#allocation2 + $0x8] sm:$0xff]   ;;  %v346_v7 = vld [vmem:[#allocation2 + $0x10] sm:$0xff]   ;;  %vm438_vm2 = vmmov 0   ;;  %v347_v8 = vld [vmem:[#allocation2 + $0x18] sm:$0xff]   ;;  %vm93_vm4 = vcmask 523264  }
  0x28   :  { %315 = vmatprep.subr.bf16.mxu1 %v437_v1  ;;  %v49_v4 = vsel %vm48_vm0, %v47_v2, 0  ;;  %304 = vmatpush3.bf16.msra.mxu0 %v344_v3  ;;  %v53_v10 = vand.u32 127, %v52_v9  ;;  %v348_v14 = vld [vmem:[#allocation5] sm:$0xff]   ;;  %v349_v15 = vld [vmem:[#allocation5 + $0x8] sm:$0xff]   ;;  %v350_v16 = vld [vmem:[#allocation5 + $0x10] sm:$0xff]   ;;  %s439_s16 = smov [#allocation7]  }
  0x29   :  { %vm50_vm1 = vcmp.lt.s32.totalorder %v49_v4, 63  ;;  %305 = vmatprep.subr.bf16.mxu0 %v437_v1  ;;  %311 = vmatprep.mubr.msk.bf16.mxu0 %vm438_vm2, %v437_v1  ;;  %v351_v17 = vld [vmem:[#allocation5 + $0x18] sm:$0xff]   ;;  %v352_v18 = vld [vmem:[#allocation5 + $0x20] sm:$0xff]   ;;  %v353_v19 = vld [vmem:[#allocation5 + $0x28] sm:$0xff]   ;;  %s263_s17 = sshll.u32 %s439_s16, 4  ;;  %s264_s17 = int_to_ptr.vmem [resolvable:$true] %s263_s17 }
  0x2a   :  { %v51_v6 = vsel %vm50_vm1, %v49_v4, 63  ;;  %331 = vmatprep.mubr.msk.bf16.mxu1 %vm438_vm2, %v437_v1  ;;  %316 = vmatpush3.bf16.msra.mxu1 %v348_v14  ;;  %v354_v20 = vld [vmem:[#allocation5 + $0x30] sm:$0xff]   ;;  %v355_v21 = vld [vmem:[#allocation5 + $0x38] sm:$0xff]   ;;  %s404_s18 = scalar_lea.vmem %s264_s17, 128  ;;  %p409_p3 = scmp.lt.s32.totalorder %s264_s17, %s264_s17 }
  0x2b   :  { %55 = vperm.xlu0 %343, %v51_v6   ;;  %317 = vmatprep.subr.bf16.mxu1 %v437_v1  ;;  %v280_v32 = vld [vmem:[%s510_s3] ss:$0 sm:$0xff]  ;;  %p405_p2 = scmp.ne.s32.totalorder %s264_s17, %s404_s18  ;;  %p410_p4 = scmp.lt.s32.totalorder %s404_s18, %s404_s18 }
  0x2c   :  { %306 = vmatpush3.bf16.msra.mxu0 %v345_v5 }
  0x2d   :  { %307 = vmatprep.subr.bf16.mxu0 %v437_v1  ;;  %p411_p5 = por %p410_p4, %p409_p3 }
  0x2e   :  { %318 = vmatpush3.bf16.msra.mxu1 %v349_v15 }
  0x2f   :  { %319 = vmatprep.subr.bf16.mxu1 %v437_v1  ;;  %p412_p6 = pnand %p411_p5, %p405_p2 }
  0x30   :  { %308 = vmatpush3.bf16.msra.mxu0 %v346_v7 }
  0x31   :  { %309 = vmatprep.subr.bf16.mxu0 %v437_v1 }
  0x32   :  { %320 = vmatpush3.bf16.msra.mxu1 %v350_v16 }
  0x33   :  { %321 = vmatprep.subr.bf16.mxu1 %v437_v1 }
  0x34   :  { %310 = vmatpush3.bf16.msra.mxu0 %v347_v8 }
  0x36   :  { %322 = vmatpush3.bf16.msra.mxu1 %v351_v17 }
  0x37   :  { %323 = vmatprep.subr.bf16.mxu1 %v437_v1 }
  0x3a   :  { %324 = vmatpush3.bf16.msra.mxu1 %v352_v18 }
  0x3b   :  { %325 = vmatprep.subr.bf16.mxu1 %v437_v1 }
  0x3e   :  { %326 = vmatpush3.bf16.msra.mxu1 %v353_v19 }
  0x3f   :  { %327 = vmatprep.subr.bf16.mxu1 %v437_v1 }
  0x42   :  { %328 = vmatpush3.bf16.msra.mxu1 %v354_v20 }
  0x43   :  { %329 = vmatprep.subr.bf16.mxu1 %v437_v1 }
  0x46   :  { %330 = vmatpush3.bf16.msra.mxu1 %v355_v21 }
  0xaa   :  { %v56_v11 = vpop.permute.xlu0 %55 }
  0xab   :  { %vm57_vm3 = vcmp.eq.s32.totalorder %v53_v10, %v56_v11 }
  0xac   :  { %v273_v12 = vsel %vm57_vm3, 1.0, %v437_v1 }
  0xad   :  { %v60_v13 = vpack.c.bf16 %v273_v12, %v273_v12 }
  0xaf   :  { %312 = vmatmul.mubr.msk.bf16.vlgmr.msra.gmra.mrb[0].mxu0 %vm93_vm4, %v60_v13 }
 0x182   :  { %v131_v22 = vpop.f32.mrb[0].mxu0 }
 0x183   :  { %v279_v23 = vmul.f32 -1.442695, %v131_v22  ;;  %v313_v24 = vpop.f32.mrb[1].mxu0 }
 0x184   :  { %v134_v25 = vpop.f32.mrb[2].mxu0 }
 0x185   :  { %356 = vpow2.f32 %v279_v23  ;;  %v314_v26 = vpop.f32.mrb[3].mxu0 }
 0x18f   :  { %v357_v27 = vpop.eup %356 }
 0x190   :  { %v140_v28 = vadd.f32 1.0, %v357_v27 }
 0x192   :  { %358 = vrcp.f32 %v140_v28 }
 0x19c   :  { %v359_v29 = vpop.eup %358 }
 0x19d   :  { %v143_v30 = vmul.f32 %v359_v29, %v131_v22 }
 0x19f   :  { %v144_v31 = vpack.c.bf16 %v143_v30, %v143_v30 }
 0x1a1   :  { %332 = vmatmul.mubr.bf16.vlgmr.msra.gmra.mrb[0].mxu1 %v144_v31 }
 0x274   :  { %v250_v33 = vpop.f32.mrb[0].mxu1 }
 0x275   :  { %v251_v34 = vadd.f32 %v280_v32, %v250_v33  ;;  %v333_v35 = vpop.f32.mrb[1].mxu1 }
 0x276   :  { %v253_v36 = vpop.f32.mrb[2].mxu1 }
 0x277   :  { %256 = vst [vmem:[#allocation7] sm:$0xff] %v251_v34  ;;  %v334_v37 = vpop.f32.mrb[3].mxu1 }
 0x278   :  { %415 = shalt.err (!%p412_p6)
}
 0x279   :  { %s416_s3 = scalar_lea.hbm %s511_s4, 128 }
 0x27a   :  { %p417_p7 = scmp.ne.s32.totalorder %s511_s4, %s416_s3  ;;  %p420_p8 = scmp.lt.u32.totalorder %s416_s3, %s511_s4 }
 0x27c   :  { %p422_p9 = pnand %p420_p8, %p417_p7 }
 0x27e   :  { %425 = shalt.err (!%p422_p9)
}
 0x27f   :  { %266 = dma.vmem_to_hbm [thread:$0]  %s264_s17, 128, %s511_s4, [#allocation4]  }
 0x280   :  { %430 = dma.done.wait [#allocation4], 128  }
 0x281   :  { %431 = vsyncadd [#allocation4], 4294967168 }
 0x282   :  { %270 = vsyncpa [#allocation3], 1 }
 0x283   :  { %271 = vsyncpa [#allocation6], 1 }
 0x284   :  { %272 = vsyncpa [#allocation4], 1 }

</bundles_post_ra>
